<compile_context>
chip_gen: v7x
topology: tpu7x:2x2x1
jax: 0.10.0
libtpu: 0.0.40
codegen_flags: <defaults>
</compile_context>

<pallas_src>
import jax
import jax.numpy as jnp
from jax import lax
from jax.experimental import pallas as pl
from jax.experimental.pallas import tpu as pltpu

BN_EPS = 1e-5


def _round_up(v, m):
    return (v + m - 1) // m * m


def conv_bn_forward(x_nchw, w_oihw, gamma, beta, eps=BN_EPS):
    """Conv2d(3x3, padding='same', bias=False) -> BatchNorm2d (training-mode stats).

    x_nchw: (N, C, H, W); w_oihw: (F, C, 3, 3); gamma, beta: (F,).
    Returns (N, F, H, W) float32.
    """
    N, C, H, W = x_nchw.shape
    F_out = w_oihw.shape[0]
    Wp = W + 2                      # row stride of the zero-padded image
    HALO = 2 * Wp + 2               # largest tap offset (kh=2, kw=2)

    # bf16 MXU operands: round sublane dims to 16 (bf16 packs 16 rows / vreg).
    C_pad = _round_up(C, 16)
    F_pad = _round_up(F_out, 16)

    # Top-left anchored flat output positions: output pixel (i, j) lives at
    # p = i*Wp + j.  We compute p in [0, So_pad) and mask / crop the rest.
    needed = (H - 1) * Wp + W
    So_blk = min(_round_up(needed, 128), max(256, _round_up(6 * HALO, 128)))
    NS = -(-needed // So_blk)       # lane tiles per image
    So_pad = NS * So_blk
    Wb = So_blk + HALO              # per-tile input window incl. conv halo

    # Zero margin below the image so every window read stays in bounds.
    rows_total = -(-(So_pad + HALO) // Wp)
    pad_bot = max(rows_total - (H + 1), 1)
    Se = (H + 1 + pad_bot) * Wp

    # ---- host-side prep: ONE pad+cast materialization of x ----
    x_flat = jnp.pad(x_nchw.astype(jnp.bfloat16),
                     ((0, 0), (0, C_pad - C), (1, pad_bot), (1, 1))
                     ).reshape(N, C_pad, Se)
    # Per-tile overlapping windows (halo duplicated) so all in-kernel tap
    # slices are static lane offsets; ~HALO/So_blk extra input bytes (~15% at
    # this toy size, <~15% at realistic sizes with So_blk >= ~6*HALO).
    x_win = jnp.stack(
        [lax.slice_in_dim(x_flat, s * So_blk, s * So_blk + Wb, axis=2)
         for s in range(NS)], axis=1)                        # (N, NS, C_pad, Wb)

    # Weights: (F, C, 3, 3) -> (F_pad, 9*C_pad); contraction index = tap*C_pad + c.
    w2d = jnp.transpose(w_oihw, (0, 2, 3, 1))                # (F, 3, 3, C)
    w2d = jnp.pad(w2d, ((0, F_pad - F_out), (0, 0), (0, 0), (0, C_pad - C)))
    w2d = w2d.reshape(F_pad, 9 * C_pad).astype(jnp.bfloat16)

    # Interior mask over flattened output positions (1.0 = real pixel).
    pos = jnp.arange(So_pad)
    mask = (((pos % Wp) < W) & ((pos // Wp) < H)).astype(jnp.float32)
    mask = mask.reshape(1, So_pad)

    # ---- pass 1: im2col slab + single MXU dot + per-tile partial stats ----
    def conv_stats_kernel(x_ref, w_ref, mask_ref, y_ref, sum_ref, ssq_ref,
                          slab_ref):
        # x_ref: (C_pad, Wb) bf16 window     w_ref: (F_pad, 9*C_pad) bf16
        # slab_ref: (9*C_pad, So_blk) bf16 VMEM scratch (im2col slab)
        for t in range(9):                                   # static lane offsets
            kh, kw = divmod(t, 3)
            off = kh * Wp + kw
            slab_ref[t * C_pad:(t + 1) * C_pad, :] = x_ref[:, off:off + So_blk]
        acc = jnp.dot(w_ref[...], slab_ref[...],
                      preferred_element_type=jnp.float32)    # (F_pad, So_blk) f32
        y_ref[...] = acc.astype(y_ref.dtype)                 # bf16 intermediate
        ym = acc * mask_ref[...]                             # stats stay in f32
        sum_ref[...] = jnp.sum(ym, axis=1, keepdims=True)
        ssq_ref[...] = jnp.sum(ym * ym, axis=1, keepdims=True)

    flops = 2 * N * NS * F_pad * (9 * C_pad) * So_blk + 4 * N * F_pad * So_pad
    bytes_accessed = (x_win.size * 2 + w2d.size * 2 + mask.size * 4
                      + N * F_pad * So_pad * 2 + 4 * N * NS * F_pad * 4)

    y, sums, ssqs = pl.pallas_call(
        conv_stats_kernel,
        grid=(N, NS),
        in_specs=[
            pl.BlockSpec((None, None, C_pad, Wb), lambda i, s: (i, s, 0, 0)),
            pl.BlockSpec((F_pad, 9 * C_pad), lambda i, s: (0, 0)),   # resident
            pl.BlockSpec((1, So_blk), lambda i, s: (0, s)),
        ],
        out_specs=(
            pl.BlockSpec((None, F_pad, So_blk), lambda i, s: (i, 0, s)),
            pl.BlockSpec((None, None, F_pad, 1), lambda i, s: (i, s, 0, 0)),
            pl.BlockSpec((None, None, F_pad, 1), lambda i, s: (i, s, 0, 0)),
        ),
        out_shape=(
            jax.ShapeDtypeStruct((N, F_pad, So_pad), jnp.bfloat16),
            jax.ShapeDtypeStruct((N, NS, F_pad, 1), jnp.float32),
            jax.ShapeDtypeStruct((N, NS, F_pad, 1), jnp.float32),
        ),
        scratch_shapes=[pltpu.VMEM((9 * C_pad, So_blk), jnp.bfloat16)],
        compiler_params=pltpu.CompilerParams(
            dimension_semantics=("parallel", "parallel"),
            # Per-step footprint here is a few hundred KiB; 48 MiB is above the
            # 16/32 MiB scoped defaults (v5e/v6e) so larger S-tiles can be used
            # at real sizes, and still under v7x's 64 MiB physical VMEM.
            vmem_limit_bytes=48 * 1024 * 1024,
        ),
        cost_estimate=pl.CostEstimate(flops=flops, transcendentals=0,
                                      bytes_accessed=bytes_accessed),
    )(x_win, w2d, mask)

    # ---- tiny XLA reduction: batch stats -> fused scale/shift ----
    count = jnp.float32(N * H * W)
    mean = jnp.sum(sums, axis=(0, 1)) / count                 # (F_pad, 1)
    var = jnp.maximum(jnp.sum(ssqs, axis=(0, 1)) / count - mean * mean, 0.0)
    # TODO(synk): merge the per-tile partials with a Welford/M2 merge instead of
    # E[y^2]-E[y]^2 if N*H*W gets large enough for f32 cancellation to matter.
    gamma_p = jnp.pad(gamma.astype(jnp.float32), (0, F_pad - F_out)).reshape(F_pad, 1)
    beta_p = jnp.pad(beta.astype(jnp.float32), (0, F_pad - F_out)).reshape(F_pad, 1)
    scale = gamma_p * lax.rsqrt(var + eps)
    shift = beta_p - mean * scale

    # ---- pass 2: BN FMA + fused interior crop, lane-dense store per image ----
    HW = H * W

    def bn_apply_kernel(y_ref, scale_ref, shift_ref, o_ref, row_ref):
        # Gather the interior W-wide row segments (static offsets) into a
        # contiguous VMEM row buffer, then FMA once and store a single
        # lane-dense (F_out, H*W) block.
        for r in range(H):
            row_ref[:, r * W:(r + 1) * W] = y_ref[:F_out, r * Wp:r * Wp + W]
        z = row_ref[...].astype(jnp.float32)
        o_ref[...] = z * scale_ref[:F_out, :] + shift_ref[:F_out, :]

    out_flat = pl.pallas_call(
        bn_apply_kernel,
        grid=(N,),
        in_specs=[
            pl.BlockSpec((None, F_pad, So_pad), lambda i: (i, 0, 0)),
            pl.BlockSpec((F_pad, 1), lambda i: (0, 0)),
            pl.BlockSpec((F_pad, 1), lambda i: (0, 0)),
        ],
        out_specs=pl.BlockSpec((None, F_out, HW), lambda i: (i, 0, 0)),
        out_shape=jax.ShapeDtypeStruct((N, F_out, HW), jnp.float32),
        scratch_shapes=[pltpu.VMEM((F_out, HW), jnp.bfloat16)],
        compiler_params=pltpu.CompilerParams(
            dimension_semantics=("parallel",),
            vmem_limit_bytes=48 * 1024 * 1024,
        ),
    )(y, scale, shift)
    # TODO(synk): for large H*W, additionally tile pass 2 over row groups so the
    # per-image y block stays within v7x's 64 MiB VMEM.

    # Free contiguous reshape to NCHW; no extra HBM pass.
    # TODO(synk): PyTorch training-mode BN also updates running_mean/running_var;
    # only the forward output is produced here.
    return out_flat.reshape(N, F_out, H, W)


def _reference_consistent(x, w, gamma, beta, eps=BN_EPS):
    # Same precision contract as the kernel: bf16 conv operands, f32
    # accumulation/statistics, conv intermediate rounded to bf16 before the
    # BN affine.
    y = lax.conv_general_dilated(
        x.astype(jnp.bfloat16), w.astype(jnp.bfloat16), (1, 1), "SAME",
        dimension_numbers=("NCHW", "OIHW", "NCHW"),
        preferred_element_type=jnp.float32)
    mean = y.mean(axis=(0, 2, 3), keepdims=True)
    var = ((y - mean) ** 2).mean(axis=(0, 2, 3), keepdims=True)
    scale = gamma.reshape(1, -1, 1, 1) * lax.rsqrt(var + eps)
    shift = beta.reshape(1, -1, 1, 1) - mean * scale
    yq = y.astype(jnp.bfloat16).astype(jnp.float32)
    return yq * scale + shift


def _reference_f32(x, w, gamma, beta, eps=BN_EPS):
    # PyTorch-exact math in f32 (loose sanity bound for the bf16 contract).
    y = lax.conv_general_dilated(
        x, w, (1, 1), "SAME", dimension_numbers=("NCHW", "OIHW", "NCHW"))
    mean = y.mean(axis=(0, 2, 3), keepdims=True)
    var = ((y - mean) ** 2).mean(axis=(0, 2, 3), keepdims=True)
    yn = (y - mean) * lax.rsqrt(var + eps)
    return yn * gamma.reshape(1, -1, 1, 1) + beta.reshape(1, -1, 1, 1)


if __name__ == "__main__":
    key = jax.random.PRNGKey(0)
    N, C, H, W = 2, 4, 16, 16
    F_out = 8

    kx, kw = jax.random.split(key)
    x = jax.random.normal(kx, (N, C, H, W), dtype=jnp.float32)
    # Conv2d weight (kaiming-uniform-ish deterministic init), no bias.
    fan_in = C * 3 * 3
    bound = (1.0 / fan_in) ** 0.5
    w = jax.random.uniform(kw, (F_out, C, 3, 3), dtype=jnp.float32,
                           minval=-bound, maxval=bound)
    # BatchNorm2d default init: weight=1, bias=0.
    gamma = jnp.ones((F_out,), dtype=jnp.float32)
    beta = jnp.zeros((F_out,), dtype=jnp.float32)

    out = jax.block_until_ready(jax.jit(conv_bn_forward)(x, w, gamma, beta))
    assert out.shape == (N, F_out, H, W), out.shape

    ref_c = _reference_consistent(x, w, gamma, beta)
    ref_f = _reference_f32(x, w, gamma, beta)
    err_c = float(jnp.max(jnp.abs(out - ref_c)))
    err_f = float(jnp.max(jnp.abs(out - ref_f)))
    # Tolerance vs the bf16-contract reference covers +-1 bf16 ulp straddling on
    # the intermediate; tolerance vs exact f32 documents the precision contract
    # (bf16 conv operands + bf16 conv intermediate).
    assert jnp.allclose(out, ref_c, atol=2e-2, rtol=2e-2), f"max err (bf16 ref) {err_c}"
    assert jnp.allclose(out, ref_f, atol=5e-2, rtol=5e-2), f"max err (f32 ref)  {err_f}"
    print("KERNEL_OK")
</pallas_src>

<mosaic_0001>
module attributes {stable_mosaic.version = 11 : i64} {
  func.func @conv_stats_kernel(%arg0: i32, %arg1: i32, %arg2: memref<1x1x16x294xbf16, #tpu.memory_space<vmem>>, %arg3: memref<16x144xbf16, #tpu.memory_space<vmem>>, %arg4: memref<1x256xf32, #tpu.memory_space<vmem>>, %arg5: memref<1x16x256xbf16, #tpu.memory_space<vmem>>, %arg6: memref<1x1x16x1xf32, #tpu.memory_space<vmem>>, %arg7: memref<1x1x16x1xf32, #tpu.memory_space<vmem>>, %arg8: memref<144x256xbf16, #tpu.memory_space<vmem>>) attributes {dimension_semantics = [#tpu.dimension_semantics<parallel>, #tpu.dimension_semantics<parallel>], iteration_bounds = array<i64: 2, 2>, scalar_prefetch = 0 : i64, scratch_operands = 1 : i64, tpu.core_type = #tpu.core_type<tc>, window_params = [{transform_indices = @transform_0, window_bounds = array<i64: 1, 1, 16, 294>}, {pipeline_mode = #tpu.pipeline_mode<synchronous>, transform_indices = @transform_1, window_bounds = array<i64: 16, 144>}, {transform_indices = @transform_2, window_bounds = array<i64: 1, 256>}, {transform_indices = @transform_3, window_bounds = array<i64: 1, 16, 256>}, {transform_indices = @transform_4, window_bounds = array<i64: 1, 1, 16, 1>}, {transform_indices = @transform_5, window_bounds = array<i64: 1, 1, 16, 1>}]} {
    %c0 = arith.constant 0 : index
    %c0_0 = arith.constant 0 : index
    %c0_1 = arith.constant 0 : index
    %c0_2 = arith.constant 0 : index
    %0 = vector.load %arg2[%c0, %c0_0, %c0_1, %c0_2] : memref<1x1x16x294xbf16, #tpu.memory_space<vmem>>, vector<1x1x16x256xbf16>
    %1 = vector.shape_cast %0 : vector<1x1x16x256xbf16> to vector<16x256xbf16>
    %c0_3 = arith.constant 0 : index
    %c0_4 = arith.constant 0 : index
    %2 = vector.load %arg8[%c0_3, %c0_4] : memref<144x256xbf16, #tpu.memory_space<vmem>>, vector<16x256xbf16>
    tpu.vector_store %arg8[%c0_3, %c0_4], %1 {strides = array<i32>} : memref<144x256xbf16, #tpu.memory_space<vmem>>, vector<16x256xbf16>,
    %c0_5 = arith.constant 0 : index
    %c0_6 = arith.constant 0 : index
    %c0_7 = arith.constant 0 : index
    %c1 = arith.constant 1 : index
    %3 = vector.load %arg2[%c0_5, %c0_6, %c0_7, %c1] : memref<1x1x16x294xbf16, #tpu.memory_space<vmem>>, vector<1x1x16x256xbf16>
    %4 = vector.shape_cast %3 : vector<1x1x16x256xbf16> to vector<16x256xbf16>
    %c16 = arith.constant 16 : index
    %c0_8 = arith.constant 0 : index
    %5 = vector.load %arg8[%c16, %c0_8] : memref<144x256xbf16, #tpu.memory_space<vmem>>, vector<16x256xbf16>
    tpu.vector_store %arg8[%c16, %c0_8], %4 {strides = array<i32>} : memref<144x256xbf16, #tpu.memory_space<vmem>>, vector<16x256xbf16>,
    %c0_9 = arith.constant 0 : index
    %c0_10 = arith.constant 0 : index
    %c0_11 = arith.constant 0 : index
    %c2 = arith.constant 2 : index
    %6 = vector.load %arg2[%c0_9, %c0_10, %c0_11, %c2] : memref<1x1x16x294xbf16, #tpu.memory_space<vmem>>, vector<1x1x16x256xbf16>
    %7 = vector.shape_cast %6 : vector<1x1x16x256xbf16> to vector<16x256xbf16>
    %c32 = arith.constant 32 : index
    %c0_12 = arith.constant 0 : index
    %8 = vector.load %arg8[%c32, %c0_12] : memref<144x256xbf16, #tpu.memory_space<vmem>>, vector<16x256xbf16>
    tpu.vector_store %arg8[%c32, %c0_12], %7 {strides = array<i32>} : memref<144x256xbf16, #tpu.memory_space<vmem>>, vector<16x256xbf16>,
    %c0_13 = arith.constant 0 : index
    %c0_14 = arith.constant 0 : index
    %c0_15 = arith.constant 0 : index
    %c18 = arith.constant 18 : index
    %9 = vector.load %arg2[%c0_13, %c0_14, %c0_15, %c18] : memref<1x1x16x294xbf16, #tpu.memory_space<vmem>>, vector<1x1x16x256xbf16>
    %10 = vector.shape_cast %9 : vector<1x1x16x256xbf16> to vector<16x256xbf16>
    %c48 = arith.constant 48 : index
    %c0_16 = arith.constant 0 : index
    %11 = vector.load %arg8[%c48, %c0_16] : memref<144x256xbf16, #tpu.memory_space<vmem>>, vector<16x256xbf16>
    tpu.vector_store %arg8[%c48, %c0_16], %10 {strides = array<i32>} : memref<144x256xbf16, #tpu.memory_space<vmem>>, vector<16x256xbf16>,
    %c0_17 = arith.constant 0 : index
    %c0_18 = arith.constant 0 : index
    %c0_19 = arith.constant 0 : index
    %c19 = arith.constant 19 : index
    %12 = vector.load %arg2[%c0_17, %c0_18, %c0_19, %c19] : memref<1x1x16x294xbf16, #tpu.memory_space<vmem>>, vector<1x1x16x256xbf16>
    %13 = vector.shape_cast %12 : vector<1x1x16x256xbf16> to vector<16x256xbf16>
    %c64 = arith.constant 64 : index
    %c0_20 = arith.constant 0 : index
    %14 = vector.load %arg8[%c64, %c0_20] : memref<144x256xbf16, #tpu.memory_space<vmem>>, vector<16x256xbf16>
    tpu.vector_store %arg8[%c64, %c0_20], %13 {strides = array<i32>} : memref<144x256xbf16, #tpu.memory_space<vmem>>, vector<16x256xbf16>,
    %c0_21 = arith.constant 0 : index
    %c0_22 = arith.constant 0 : index
    %c0_23 = arith.constant 0 : index
    %c20 = arith.constant 20 : index
    %15 = vector.load %arg2[%c0_21, %c0_22, %c0_23, %c20] : memref<1x1x16x294xbf16, #tpu.memory_space<vmem>>, vector<1x1x16x256xbf16>
    %16 = vector.shape_cast %15 : vector<1x1x16x256xbf16> to vector<16x256xbf16>
    %c80 = arith.constant 80 : index
    %c0_24 = arith.constant 0 : index
    %17 = vector.load %arg8[%c80, %c0_24] : memref<144x256xbf16, #tpu.memory_space<vmem>>, vector<16x256xbf16>
    tpu.vector_store %arg8[%c80, %c0_24], %16 {strides = array<i32>} : memref<144x256xbf16, #tpu.memory_space<vmem>>, vector<16x256xbf16>,
    %c0_25 = arith.constant 0 : index
    %c0_26 = arith.constant 0 : index
    %c0_27 = arith.constant 0 : index
    %c36 = arith.constant 36 : index
    %18 = vector.load %arg2[%c0_25, %c0_26, %c0_27, %c36] : memref<1x1x16x294xbf16, #tpu.memory_space<vmem>>, vector<1x1x16x256xbf16>
    %19 = vector.shape_cast %18 : vector<1x1x16x256xbf16> to vector<16x256xbf16>
    %c96 = arith.constant 96 : index
    %c0_28 = arith.constant 0 : index
    %20 = vector.load %arg8[%c96, %c0_28] : memref<144x256xbf16, #tpu.memory_space<vmem>>, vector<16x256xbf16>
    tpu.vector_store %arg8[%c96, %c0_28], %19 {strides = array<i32>} : memref<144x256xbf16, #tpu.memory_space<vmem>>, vector<16x256xbf16>,
    %c0_29 = arith.constant 0 : index
    %c0_30 = arith.constant 0 : index
    %c0_31 = arith.constant 0 : index
    %c37 = arith.constant 37 : index
    %21 = vector.load %arg2[%c0_29, %c0_30, %c0_31, %c37] : memref<1x1x16x294xbf16, #tpu.memory_space<vmem>>, vector<1x1x16x256xbf16>
    %22 = vector.shape_cast %21 : vector<1x1x16x256xbf16> to vector<16x256xbf16>
    %c112 = arith.constant 112 : index
    %c0_32 = arith.constant 0 : index
    %23 = vector.load %arg8[%c112, %c0_32] : memref<144x256xbf16, #tpu.memory_space<vmem>>, vector<16x256xbf16>
    tpu.vector_store %arg8[%c112, %c0_32], %22 {strides = array<i32>} : memref<144x256xbf16, #tpu.memory_space<vmem>>, vector<16x256xbf16>,
    %c0_33 = arith.constant 0 : index
    %c0_34 = arith.constant 0 : index
    %c0_35 = arith.constant 0 : index
    %c38 = arith.constant 38 : index
    %24 = vector.load %arg2[%c0_33, %c0_34, %c0_35, %c38] : memref<1x1x16x294xbf16, #tpu.memory_space<vmem>>, vector<1x1x16x256xbf16>
    %25 = vector.shape_cast %24 : vector<1x1x16x256xbf16> to vector<16x256xbf16>
    %c128 = arith.constant 128 : index
    %c0_36 = arith.constant 0 : index
    %26 = vector.load %arg8[%c128, %c0_36] : memref<144x256xbf16, #tpu.memory_space<vmem>>, vector<16x256xbf16>
    tpu.vector_store %arg8[%c128, %c0_36], %25 {strides = array<i32>} : memref<144x256xbf16, #tpu.memory_space<vmem>>, vector<16x256xbf16>,
    %c0_37 = arith.constant 0 : index
    %c0_38 = arith.constant 0 : index
    %27 = vector.load %arg3[%c0_37, %c0_38] : memref<16x144xbf16, #tpu.memory_space<vmem>>, vector<16x144xbf16>
    %c0_39 = arith.constant 0 : index
    %c0_40 = arith.constant 0 : index
    %28 = vector.load %arg8[%c0_39, %c0_40] : memref<144x256xbf16, #tpu.memory_space<vmem>>, vector<144x256xbf16>
    %cst = arith.constant dense<0.000000e+00> : vector<16x256xf32>
    %29 = tpu.matmul %27, %28, %cst {dimension_numbers = #tpu.dot_dimension_numbers<[1], [0], [0], [1], [0, 0, 1, 1], [], []>} : vector<16x144xbf16>, vector<144x256xbf16>, vector<16x256xf32> -> vector<16x256xf32>
    %30 = arith.truncf %29 : vector<16x256xf32> to vector<16x256xbf16>
    %c0_41 = arith.constant 0 : index
    %c0_42 = arith.constant 0 : index
    %c0_43 = arith.constant 0 : index
    %31 = vector.load %arg5[%c0_41, %c0_42, %c0_43] : memref<1x16x256xbf16, #tpu.memory_space<vmem>>, vector<1x16x256xbf16>
    %32 = vector.shape_cast %31 : vector<1x16x256xbf16> to vector<16x256xbf16>
    %33 = vector.shape_cast %30 : vector<16x256xbf16> to vector<1x16x256xbf16>
    tpu.vector_store %arg5[%c0_41, %c0_42, %c0_43], %33 {strides = array<i32>} : memref<1x16x256xbf16, #tpu.memory_space<vmem>>, vector<1x16x256xbf16>,
    %c0_44 = arith.constant 0 : index
    %c0_45 = arith.constant 0 : index
    %34 = vector.load %arg4[%c0_44, %c0_45] : memref<1x256xf32, #tpu.memory_space<vmem>>, vector<1x256xf32>
    %35 = vector.broadcast %34 : vector<1x256xf32> to vector<16x256xf32>
    %36 = arith.mulf %29, %35 : vector<16x256xf32>
    %cst_46 = arith.constant dense<0.000000e+00> : vector<16xf32>
    %37 = vector.multi_reduction <add>, %36, %cst_46 [1] : vector<16x256xf32> to vector<16xf32>
    %38 = vector.shape_cast %37 : vector<16xf32> to vector<16x1xf32>
    %c0_47 = arith.constant 0 : index
    %c0_48 = arith.constant 0 : index
    %c0_49 = arith.constant 0 : index
    %c0_50 = arith.constant 0 : index
    %39 = vector.load %arg6[%c0_47, %c0_48, %c0_49, %c0_50] : memref<1x1x16x1xf32, #tpu.memory_space<vmem>>, vector<1x1x16x1xf32>
    %40 = vector.shape_cast %39 : vector<1x1x16x1xf32> to vector<16x1xf32>
    %41 = vector.shape_cast %38 : vector<16x1xf32> to vector<1x1x16x1xf32>
    tpu.vector_store %arg6[%c0_47, %c0_48, %c0_49, %c0_50], %41 {strides = array<i32>} : memref<1x1x16x1xf32, #tpu.memory_space<vmem>>, vector<1x1x16x1xf32>,
    %42 = arith.mulf %36, %36 : vector<16x256xf32>
    %cst_51 = arith.constant dense<0.000000e+00> : vector<16xf32>
    %43 = vector.multi_reduction <add>, %42, %cst_51 [1] : vector<16x256xf32> to vector<16xf32>
    %44 = vector.shape_cast %43 : vector<16xf32> to vector<16x1xf32>
    %c0_52 = arith.constant 0 : index
    %c0_53 = arith.constant 0 : index
    %c0_54 = arith.constant 0 : index
    %c0_55 = arith.constant 0 : index
    %45 = vector.load %arg7[%c0_52, %c0_53, %c0_54, %c0_55] : memref<1x1x16x1xf32, #tpu.memory_space<vmem>>, vector<1x1x16x1xf32>
    %46 = vector.shape_cast %45 : vector<1x1x16x1xf32> to vector<16x1xf32>
    %47 = vector.shape_cast %44 : vector<16x1xf32> to vector<1x1x16x1xf32>
    tpu.vector_store %arg7[%c0_52, %c0_53, %c0_54, %c0_55], %47 {strides = array<i32>} : memref<1x1x16x1xf32, #tpu.memory_space<vmem>>, vector<1x1x16x1xf32>,
    return
  }
  func.func @transform_0(%arg0: i32, %arg1: i32) -> (i32, i32, i32, i32) {
    %c0_i32 = arith.constant 0 : i32
    %c0_i32_0 = arith.constant 0 : i32
    %c0_i32_1 = arith.constant 0 : i32
    return %arg0, %arg1, %c0_i32, %c0_i32_0 : i32, i32, i32, i32
  }
  func.func @transform_1(%arg0: i32, %arg1: i32) -> (i32, i32) {
    %c0_i32 = arith.constant 0 : i32
    %c0_i32_0 = arith.constant 0 : i32
    %c0_i32_1 = arith.constant 0 : i32
    return %c0_i32, %c0_i32_0 : i32, i32
  }
  func.func @transform_2(%arg0: i32, %arg1: i32) -> (i32, i32) {
    %c0_i32 = arith.constant 0 : i32
    %c0_i32_0 = arith.constant 0 : i32
    return %c0_i32, %arg1 : i32, i32
  }
  func.func @transform_3(%arg0: i32, %arg1: i32) -> (i32, i32, i32) {
    %c0_i32 = arith.constant 0 : i32
    %c0_i32_0 = arith.constant 0 : i32
    return %arg0, %c0_i32, %arg1 : i32, i32, i32
  }
  func.func @transform_4(%arg0: i32, %arg1: i32) -> (i32, i32, i32, i32) {
    %c0_i32 = arith.constant 0 : i32
    %c0_i32_0 = arith.constant 0 : i32
    %c0_i32_1 = arith.constant 0 : i32
    return %arg0, %arg1, %c0_i32, %c0_i32_0 : i32, i32, i32, i32
  }
  func.func @transform_5(%arg0: i32, %arg1: i32) -> (i32, i32, i32, i32) {
    %c0_i32 = arith.constant 0 : i32
    %c0_i32_0 = arith.constant 0 : i32
    %c0_i32_1 = arith.constant 0 : i32
    return %arg0, %arg1, %c0_i32, %c0_i32_0 : i32, i32, i32, i32
  }
}

module attributes {stable_mosaic.version = 11 : i64} {
  func.func @bn_apply_kernel(%arg0: i32, %arg1: memref<1x16x512xbf16, #tpu.memory_space<vmem>>, %arg2: memref<16x1xf32, #tpu.memory_space<vmem>>, %arg3: memref<16x1xf32, #tpu.memory_space<vmem>>, %arg4: memref<1x8x256xf32, #tpu.memory_space<vmem>>, %arg5: memref<8x256xbf16, #tpu.memory_space<vmem>>) attributes {dimension_semantics = [#tpu.dimension_semantics<parallel>], iteration_bounds = array<i64: 2>, scalar_prefetch = 0 : i64, scratch_operands = 1 : i64, tpu.core_type = #tpu.core_type<tc>, window_params = [{transform_indices = @transform_0, window_bounds = array<i64: 1, 16, 512>}, {pipeline_mode = #tpu.pipeline_mode<synchronous>, transform_indices = @transform_1, window_bounds = array<i64: 16, 1>}, {pipeline_mode = #tpu.pipeline_mode<synchronous>, transform_indices = @transform_2, window_bounds = array<i64: 16, 1>}, {transform_indices = @transform_3, window_bounds = array<i64: 1, 8, 256>}]} {
    %c0 = arith.constant 0 : index
    %c0_0 = arith.constant 0 : index
    %c0_1 = arith.constant 0 : index
    %0 = vector.load %arg1[%c0, %c0_0, %c0_1] : memref<1x16x512xbf16, #tpu.memory_space<vmem>>, vector<1x8x16xbf16>
    %1 = vector.shape_cast %0 : vector<1x8x16xbf16> to vector<8x16xbf16>
    %c0_2 = arith.constant 0 : index
    %c0_3 = arith.constant 0 : index
    %2 = vector.load %arg5[%c0_2, %c0_3] : memref<8x256xbf16, #tpu.memory_space<vmem>>, vector<8x16xbf16>
    tpu.vector_store %arg5[%c0_2, %c0_3], %1 {strides = array<i32>} : memref<8x256xbf16, #tpu.memory_space<vmem>>, vector<8x16xbf16>,
    %c0_4 = arith.constant 0 : index
    %c0_5 = arith.constant 0 : index
    %c18 = arith.constant 18 : index
    %3 = vector.load %arg1[%c0_4, %c0_5, %c18] : memref<1x16x512xbf16, #tpu.memory_space<vmem>>, vector<1x8x16xbf16>
    %4 = vector.shape_cast %3 : vector<1x8x16xbf16> to vector<8x16xbf16>
    %c0_6 = arith.constant 0 : index
    %c16 = arith.constant 16 : index
    %5 = vector.load %arg5[%c0_6, %c16] : memref<8x256xbf16, #tpu.memory_space<vmem>>, vector<8x16xbf16>
    tpu.vector_store %arg5[%c0_6, %c16], %4 {strides = array<i32>} : memref<8x256xbf16, #tpu.memory_space<vmem>>, vector<8x16xbf16>,
    %c0_7 = arith.constant 0 : index
    %c0_8 = arith.constant 0 : index
    %c36 = arith.constant 36 : index
    %6 = vector.load %arg1[%c0_7, %c0_8, %c36] : memref<1x16x512xbf16, #tpu.memory_space<vmem>>, vector<1x8x16xbf16>
    %7 = vector.shape_cast %6 : vector<1x8x16xbf16> to vector<8x16xbf16>
    %c0_9 = arith.constant 0 : index
    %c32 = arith.constant 32 : index
    %8 = vector.load %arg5[%c0_9, %c32] : memref<8x256xbf16, #tpu.memory_space<vmem>>, vector<8x16xbf16>
    tpu.vector_store %arg5[%c0_9, %c32], %7 {strides = array<i32>} : memref<8x256xbf16, #tpu.memory_space<vmem>>, vector<8x16xbf16>,
    %c0_10 = arith.constant 0 : index
    %c0_11 = arith.constant 0 : index
    %c54 = arith.constant 54 : index
    %9 = vector.load %arg1[%c0_10, %c0_11, %c54] : memref<1x16x512xbf16, #tpu.memory_space<vmem>>, vector<1x8x16xbf16>
    %10 = vector.shape_cast %9 : vector<1x8x16xbf16> to vector<8x16xbf16>
    %c0_12 = arith.constant 0 : index
    %c48 = arith.constant 48 : index
    %11 = vector.load %arg5[%c0_12, %c48] : memref<8x256xbf16, #tpu.memory_space<vmem>>, vector<8x16xbf16>
    tpu.vector_store %arg5[%c0_12, %c48], %10 {strides = array<i32>} : memref<8x256xbf16, #tpu.memory_space<vmem>>, vector<8x16xbf16>,
    %c0_13 = arith.constant 0 : index
    %c0_14 = arith.constant 0 : index
    %c72 = arith.constant 72 : index
    %12 = vector.load %arg1[%c0_13, %c0_14, %c72] : memref<1x16x512xbf16, #tpu.memory_space<vmem>>, vector<1x8x16xbf16>
    %13 = vector.shape_cast %12 : vector<1x8x16xbf16> to vector<8x16xbf16>
    %c0_15 = arith.constant 0 : index
    %c64 = arith.constant 64 : index
    %14 = vector.load %arg5[%c0_15, %c64] : memref<8x256xbf16, #tpu.memory_space<vmem>>, vector<8x16xbf16>
    tpu.vector_store %arg5[%c0_15, %c64], %13 {strides = array<i32>} : memref<8x256xbf16, #tpu.memory_space<vmem>>, vector<8x16xbf16>,
    %c0_16 = arith.constant 0 : index
    %c0_17 = arith.constant 0 : index
    %c90 = arith.constant 90 : index
    %15 = vector.load %arg1[%c0_16, %c0_17, %c90] : memref<1x16x512xbf16, #tpu.memory_space<vmem>>, vector<1x8x16xbf16>
    %16 = vector.shape_cast %15 : vector<1x8x16xbf16> to vector<8x16xbf16>
    %c0_18 = arith.constant 0 : index
    %c80 = arith.constant 80 : index
    %17 = vector.load %arg5[%c0_18, %c80] : memref<8x256xbf16, #tpu.memory_space<vmem>>, vector<8x16xbf16>
    tpu.vector_store %arg5[%c0_18, %c80], %16 {strides = array<i32>} : memref<8x256xbf16, #tpu.memory_space<vmem>>, vector<8x16xbf16>,
    %c0_19 = arith.constant 0 : index
    %c0_20 = arith.constant 0 : index
    %c108 = arith.constant 108 : index
    %18 = vector.load %arg1[%c0_19, %c0_20, %c108] : memref<1x16x512xbf16, #tpu.memory_space<vmem>>, vector<1x8x16xbf16>
    %19 = vector.shape_cast %18 : vector<1x8x16xbf16> to vector<8x16xbf16>
    %c0_21 = arith.constant 0 : index
    %c96 = arith.constant 96 : index
    %20 = vector.load %arg5[%c0_21, %c96] : memref<8x256xbf16, #tpu.memory_space<vmem>>, vector<8x16xbf16>
    tpu.vector_store %arg5[%c0_21, %c96], %19 {strides = array<i32>} : memref<8x256xbf16, #tpu.memory_space<vmem>>, vector<8x16xbf16>,
    %c0_22 = arith.constant 0 : index
    %c0_23 = arith.constant 0 : index
    %c126 = arith.constant 126 : index
    %21 = vector.load %arg1[%c0_22, %c0_23, %c126] : memref<1x16x512xbf16, #tpu.memory_space<vmem>>, vector<1x8x16xbf16>
    %22 = vector.shape_cast %21 : vector<1x8x16xbf16> to vector<8x16xbf16>
    %c0_24 = arith.constant 0 : index
    %c112 = arith.constant 112 : index
    %23 = vector.load %arg5[%c0_24, %c112] : memref<8x256xbf16, #tpu.memory_space<vmem>>, vector<8x16xbf16>
    tpu.vector_store %arg5[%c0_24, %c112], %22 {strides = array<i32>} : memref<8x256xbf16, #tpu.memory_space<vmem>>, vector<8x16xbf16>,
    %c0_25 = arith.constant 0 : index
    %c0_26 = arith.constant 0 : index
    %c144 = arith.constant 144 : index
    %24 = vector.load %arg1[%c0_25, %c0_26, %c144] : memref<1x16x512xbf16, #tpu.memory_space<vmem>>, vector<1x8x16xbf16>
    %25 = vector.shape_cast %24 : vector<1x8x16xbf16> to vector<8x16xbf16>
    %c0_27 = arith.constant 0 : index
    %c128 = arith.constant 128 : index
    %26 = vector.load %arg5[%c0_27, %c128] : memref<8x256xbf16, #tpu.memory_space<vmem>>, vector<8x16xbf16>
    tpu.vector_store %arg5[%c0_27, %c128], %25 {strides = array<i32>} : memref<8x256xbf16, #tpu.memory_space<vmem>>, vector<8x16xbf16>,
    %c0_28 = arith.constant 0 : index
    %c0_29 = arith.constant 0 : index
    %c162 = arith.constant 162 : index
    %27 = vector.load %arg1[%c0_28, %c0_29, %c162] : memref<1x16x512xbf16, #tpu.memory_space<vmem>>, vector<1x8x16xbf16>
    %28 = vector.shape_cast %27 : vector<1x8x16xbf16> to vector<8x16xbf16>
    %c0_30 = arith.constant 0 : index
    %c144_31 = arith.constant 144 : index
    %29 = vector.load %arg5[%c0_30, %c144_31] : memref<8x256xbf16, #tpu.memory_space<vmem>>, vector<8x16xbf16>
    tpu.vector_store %arg5[%c0_30, %c144_31], %28 {strides = array<i32>} : memref<8x256xbf16, #tpu.memory_space<vmem>>, vector<8x16xbf16>,
    %c0_32 = arith.constant 0 : index
    %c0_33 = arith.constant 0 : index
    %c180 = arith.constant 180 : index
    %30 = vector.load %arg1[%c0_32, %c0_33, %c180] : memref<1x16x512xbf16, #tpu.memory_space<vmem>>, vector<1x8x16xbf16>
    %31 = vector.shape_cast %30 : vector<1x8x16xbf16> to vector<8x16xbf16>
    %c0_34 = arith.constant 0 : index
    %c160 = arith.constant 160 : index
    %32 = vector.load %arg5[%c0_34, %c160] : memref<8x256xbf16, #tpu.memory_space<vmem>>, vector<8x16xbf16>
    tpu.vector_store %arg5[%c0_34, %c160], %31 {strides = array<i32>} : memref<8x256xbf16, #tpu.memory_space<vmem>>, vector<8x16xbf16>,
    %c0_35 = arith.constant 0 : index
    %c0_36 = arith.constant 0 : index
    %c198 = arith.constant 198 : index
    %33 = vector.load %arg1[%c0_35, %c0_36, %c198] : memref<1x16x512xbf16, #tpu.memory_space<vmem>>, vector<1x8x16xbf16>
    %34 = vector.shape_cast %33 : vector<1x8x16xbf16> to vector<8x16xbf16>
    %c0_37 = arith.constant 0 : index
    %c176 = arith.constant 176 : index
    %35 = vector.load %arg5[%c0_37, %c176] : memref<8x256xbf16, #tpu.memory_space<vmem>>, vector<8x16xbf16>
    tpu.vector_store %arg5[%c0_37, %c176], %34 {strides = array<i32>} : memref<8x256xbf16, #tpu.memory_space<vmem>>, vector<8x16xbf16>,
    %c0_38 = arith.constant 0 : index
    %c0_39 = arith.constant 0 : index
    %c216 = arith.constant 216 : index
    %36 = vector.load %arg1[%c0_38, %c0_39, %c216] : memref<1x16x512xbf16, #tpu.memory_space<vmem>>, vector<1x8x16xbf16>
    %37 = vector.shape_cast %36 : vector<1x8x16xbf16> to vector<8x16xbf16>
    %c0_40 = arith.constant 0 : index
    %c192 = arith.constant 192 : index
    %38 = vector.load %arg5[%c0_40, %c192] : memref<8x256xbf16, #tpu.memory_space<vmem>>, vector<8x16xbf16>
    tpu.vector_store %arg5[%c0_40, %c192], %37 {strides = array<i32>} : memref<8x256xbf16, #tpu.memory_space<vmem>>, vector<8x16xbf16>,
    %c0_41 = arith.constant 0 : index
    %c0_42 = arith.constant 0 : index
    %c234 = arith.constant 234 : index
    %39 = vector.load %arg1[%c0_41, %c0_42, %c234] : memref<1x16x512xbf16, #tpu.memory_space<vmem>>, vector<1x8x16xbf16>
    %40 = vector.shape_cast %39 : vector<1x8x16xbf16> to vector<8x16xbf16>
    %c0_43 = arith.constant 0 : index
    %c208 = arith.constant 208 : index
    %41 = vector.load %arg5[%c0_43, %c208] : memref<8x256xbf16, #tpu.memory_space<vmem>>, vector<8x16xbf16>
    tpu.vector_store %arg5[%c0_43, %c208], %40 {strides = array<i32>} : memref<8x256xbf16, #tpu.memory_space<vmem>>, vector<8x16xbf16>,
    %c0_44 = arith.constant 0 : index
    %c0_45 = arith.constant 0 : index
    %c252 = arith.constant 252 : index
    %42 = vector.load %arg1[%c0_44, %c0_45, %c252] : memref<1x16x512xbf16, #tpu.memory_space<vmem>>, vector<1x8x16xbf16>
    %43 = vector.shape_cast %42 : vector<1x8x16xbf16> to vector<8x16xbf16>
    %c0_46 = arith.constant 0 : index
    %c224 = arith.constant 224 : index
    %44 = vector.load %arg5[%c0_46, %c224] : memref<8x256xbf16, #tpu.memory_space<vmem>>, vector<8x16xbf16>
    tpu.vector_store %arg5[%c0_46, %c224], %43 {strides = array<i32>} : memref<8x256xbf16, #tpu.memory_space<vmem>>, vector<8x16xbf16>,
    %c0_47 = arith.constant 0 : index
    %c0_48 = arith.constant 0 : index
    %c270 = arith.constant 270 : index
    %45 = vector.load %arg1[%c0_47, %c0_48, %c270] : memref<1x16x512xbf16, #tpu.memory_space<vmem>>, vector<1x8x16xbf16>
    %46 = vector.shape_cast %45 : vector<1x8x16xbf16> to vector<8x16xbf16>
    %c0_49 = arith.constant 0 : index
    %c240 = arith.constant 240 : index
    %47 = vector.load %arg5[%c0_49, %c240] : memref<8x256xbf16, #tpu.memory_space<vmem>>, vector<8x16xbf16>
    tpu.vector_store %arg5[%c0_49, %c240], %46 {strides = array<i32>} : memref<8x256xbf16, #tpu.memory_space<vmem>>, vector<8x16xbf16>,
    %c0_50 = arith.constant 0 : index
    %c0_51 = arith.constant 0 : index
    %48 = vector.load %arg5[%c0_50, %c0_51] : memref<8x256xbf16, #tpu.memory_space<vmem>>, vector<8x256xbf16>
    %49 = arith.extf %48 : vector<8x256xbf16> to vector<8x256xf32>
    %c0_52 = arith.constant 0 : index
    %c0_53 = arith.constant 0 : index
    %50 = vector.load %arg2[%c0_52, %c0_53] : memref<16x1xf32, #tpu.memory_space<vmem>>, vector<8x1xf32>
    %51 = vector.broadcast %50 : vector<8x1xf32> to vector<8x256xf32>
    %52 = arith.mulf %49, %51 : vector<8x256xf32>
    %c0_54 = arith.constant 0 : index
    %c0_55 = arith.constant 0 : index
    %53 = vector.load %arg3[%c0_54, %c0_55] : memref<16x1xf32, #tpu.memory_space<vmem>>, vector<8x1xf32>
    %54 = vector.broadcast %53 : vector<8x1xf32> to vector<8x256xf32>
    %55 = arith.addf %52, %54 : vector<8x256xf32>
    %c0_56 = arith.constant 0 : index
    %c0_57 = arith.constant 0 : index
    %c0_58 = arith.constant 0 : index
    %56 = vector.load %arg4[%c0_56, %c0_57, %c0_58] : memref<1x8x256xf32, #tpu.memory_space<vmem>>, vector<1x8x256xf32>
    %57 = vector.shape_cast %56 : vector<1x8x256xf32> to vector<8x256xf32>
    %58 = vector.shape_cast %55 : vector<8x256xf32> to vector<1x8x256xf32>
    tpu.vector_store %arg4[%c0_56, %c0_57, %c0_58], %58 {strides = array<i32>} : memref<1x8x256xf32, #tpu.memory_space<vmem>>, vector<1x8x256xf32>,
    return
  }
  func.func @transform_0(%arg0: i32) -> (i32, i32, i32) {
    %c0_i32 = arith.constant 0 : i32
    %c0_i32_0 = arith.constant 0 : i32
    %c0_i32_1 = arith.constant 0 : i32
    return %arg0, %c0_i32, %c0_i32_0 : i32, i32, i32
  }
  func.func @transform_1(%arg0: i32) -> (i32, i32) {
    %c0_i32 = arith.constant 0 : i32
    %c0_i32_0 = arith.constant 0 : i32
    %c0_i32_1 = arith.constant 0 : i32
    return %c0_i32, %c0_i32_0 : i32, i32
  }
  func.func @transform_2(%arg0: i32) -> (i32, i32) {
    %c0_i32 = arith.constant 0 : i32
    %c0_i32_0 = arith.constant 0 : i32
    %c0_i32_1 = arith.constant 0 : i32
    return %c0_i32, %c0_i32_0 : i32, i32
  }
  func.func @transform_3(%arg0: i32) -> (i32, i32, i32) {
    %c0_i32 = arith.constant 0 : i32
    %c0_i32_0 = arith.constant 0 : i32
    %c0_i32_1 = arith.constant 0 : i32
    return %arg0, %c0_i32, %c0_i32_0 : i32, i32, i32
  }
}

</mosaic_0001>

<bundles_post_ra>
// kernel: conv_bn_forward.3
= control target key start
LH: loop header
LB: loop body
LE: loop exit
PB: predicated region body
PF: predicated region fallthrough
CT: control target
= control target key end

     0   :  { %s436_s12 = smov 0   ;;  %s485_s0 = inlined_call_operand.vmem [shape: bf16[2,16,512], index: 0, kind: input, shape index: {}]   ;;  %s486_s1 = inlined_call_operand.vmem [shape: f32[16,1], index: 1, kind: input, shape index: {}]   ;;  %s487_s2 = inlined_call_operand.vmem [shape: f32[16,1], index: 2, kind: input, shape index: {}]   ;;  %s488_s3 = inlined_call_operand.vmem [shape: f32[2,8,256], index: 3, kind: output, shape index: {}]  }
   0x1 LB: > { %s353_s13 = sadd.s32 4294967295, %s398_s12   ;;  %p357_p0 = scmp.ge.s32.totalorder %s398_s12, 1  ;;  %s398_s12 = sphi %s436_s12, %s13_s12  }
   0x2   : > { %p137_p1 = scmp.lt.s32.totalorder %s398_s12, 3 }
   0x4   : > { %p138_p2 = pnand %p357_p0, %p137_p1 }
   0x5   : > { %p161_p3 = scmp.lt.s32.totalorder (!%p138_p2), %s353_s13, 1  ;;  %v400_v0 = vmov (!%p138_p2), 0   ;;  %s401_s18 = smov (!%p138_p2), 110   ;;  %vm172_vm0 = vcmask (!%p138_p2), 125952   ;;  %v280_v16 = vld [vmem:[%s486_s1] sm:$0xff] (!%p138_p2)  ;;  %vm179_vm1 = vcmask (!%p138_p2), 257152  }
   0x6   : > { %141 = sbr.rel (%p138_p2) target bundleno = 181 (0xb5), region = 32  ;;  %390 = vset.pattern.permute.xlu1 (!%p138_p2), %v400_v0  ;;  %391 = vset.pattern.permute.xlu0 (!%p138_p2), %v400_v0  ;;  %s402_s19 = smov (!%p138_p2), 112   ;;  %v288_v18 = vld [vmem:[%s487_s2] sm:$0xff] (!%p138_p2)  ;;  %vm186_vm2 = vcmask (!%p138_p2), 388352   ;;  %vm193_vm3 = vcmask (!%p138_p2), 519552   ;;  %vm200_vm4 = vcmask (!%p138_p2), 650752  }
   0x7   : > { %s403_s20 = smov (!%p138_p2), 124   ;;  %s404_s21 = smov (!%p138_p2), 126   ;;  %vm207_vm5 = vcmask (!%p138_p2), 781952   ;;  %vm267_vm6 = vcmask (!%p138_p2), 818176   ;;  %vm221_vm7 = vcmask (!%p138_p2), 932864   ;;  %vm214_vm8 = vcmask (!%p138_p2), 913152  }
   0x8   : > { %s405_s22 = smov (!%p138_p2), 122   ;;  %s406_s23 = smov (!%p138_p2), 108   ;;  %vm224_vm9 = vcmask (!%p138_p2), 1044352  }
   0x9   : > { %s407_s24 = smov (!%p138_p2), 100   ;;  %s408_s25 = smov (!%p138_p2), 106  }
   0xa   : > { %s409_s26 = smov (!%p138_p2), 114   ;;  %s410_s27 = smov (!%p138_p2), 120  }
   0xb   : > { %s411_s28 = smov (!%p138_p2), 118   ;;  %s412_s29 = smov (!%p138_p2), 104  }
   0xc   : > { %s413_s30 = smov (!%p138_p2), 116   ;;  %s414_s4 = smov (!%p138_p2), 102  }
   0xd   : > { %s490_s13 = smov (!%p161_p3, %s353_s13), 1  ;;  %s415_s7 = smov 98  }
   0xe   : > { %s364_s14 = sshll.u32 %s490_s13, 5  ;;  %s365_s10 = sshll.u32 %s490_s13, 4 }
   0xf   : > { %s450_s17 = scalar_lea.vmem %s485_s0, %s364_s14  ;;  %s170_s15 = scalar_lea.vmem %s488_s3, %s365_s10 }
  0x10   : > { %v232_v1 = vld [vmem:[%s450_s17 + $0x4] sm:$0xf]  ;;  %v181_v3 = vld [vmem:[%s450_s17] sm:$0xf]  ;;  %v271_v17 = vld [vmem:[%s450_s17 + $0x8] sm:$0xf] }
  0x11   : > { %v226_v2 = vld [vmem:[%s450_s17 + $0x4] sm:$0xf]  ;;  %234 = vrot.lane.b32.xlu1 %v232_v1, %s401_s18  ;;  %v174_v4 = vld [vmem:[%s450_s17] sm:$0xf] }
  0x12   : > { %228 = vrot.lane.b32.xlu0 %v226_v2, %s402_s19  ;;  %v188_v5 = vld [vmem:[%s450_s17] sm:$0xf]  ;;  %v238_v6 = vld [vmem:[%s450_s17 + $0x4] sm:$0xf] }
  0x13   : > { %v171_v7 = vld [vmem:[%s450_s17] sm:$0xf]  ;;  %v262_v8 = vld [vmem:[%s450_s17 + $0x4] sm:$0xff] }
  0x14   : > { %173 = vst.msk [vmem:[#allocation2] sm:$0xf] %vm172_vm0, %v171_v7  ;;  %v244_v9 = vld [vmem:[%s450_s17 + $0x4] sm:$0xf]  ;;  %v195_v11 = vld [vmem:[%s450_s17] sm:$0xf] }
  0x15   : > { %183 = vrot.lane.b32.xlu1 %v181_v3, %s403_s20  ;;  %v216_v10 = vld [vmem:[%s450_s17] sm:$0xff] }
  0x16   : > { %176 = vrot.lane.b32.xlu0 %v174_v4, %s404_s21  ;;  %v202_v12 = vld [vmem:[%s450_s17] sm:$0xf]  ;;  %v250_v13 = vld [vmem:[%s450_s17 + $0x4] sm:$0xf] }
  0x17   : > { %v209_v14 = vld [vmem:[%s450_s17] sm:$0xf]  ;;  %v256_v15 = vld [vmem:[%s450_s17 + $0x4] sm:$0xf] }
  0x19   : > { %190 = vrot.lane.b32.xlu1 %v188_v5, %s405_s22 }
  0x1a   : > { %240 = vrot.lane.b32.xlu0 %v238_v6, %s406_s23 }
  0x1d   : > { %264 = vrot.lane.b32.xlu1 %v262_v8, %s407_s24 }
  0x1e   : > { %246 = vrot.lane.b32.xlu0 %v244_v9, %s408_s25 }
  0x21   : > { %218 = vrot.lane.b32.xlu1 %v216_v10, %s409_s26 }
  0x22   : > { %197 = vrot.lane.b32.xlu0 %v195_v11, %s410_s27 }
  0x25   : > { %204 = vrot.lane.b32.xlu1 %v202_v12, %s411_s28 }
  0x26   : > { %252 = vrot.lane.b32.xlu0 %v250_v13, %s412_s29 }
  0x29   : > { %211 = vrot.lane.b32.xlu1 %v209_v14, %s413_s30 }
  0x2a   : > { %258 = vrot.lane.b32.xlu0 %v256_v15, %s414_s4 }
  0x2d   : > { %283 = vperm.xlu1 %390, %v280_v16  }
  0x2e   : > { %273 = vrot.lane.b32.xlu0 %v271_v17, %s415_s7 }
  0x32   : > { %291 = vperm.xlu0 %391, %v288_v18  }
  0x83   : > { %v235_v19 = vpop.permute.xlu1 %234 }
  0x84   : > { %v229_v20 = vpop.permute.xlu0 %228 }
  0x85   : > { %231 = vst.msk [vmem:[#allocation2 + $0x4] sm:$0xf] %vm172_vm0, %v229_v20 }
  0x86   : > { %237 = vst.msk [vmem:[#allocation2 + $0x4] sm:$0xf] %vm179_vm1, %v235_v19 }
  0x87   : > { %v184_v21 = vpop.permute.xlu1 %183 }
  0x88   : > { %v177_v22 = vpop.permute.xlu0 %176 }
  0x89   : > { %180 = vst.msk [vmem:[#allocation2] sm:$0xf] %vm179_vm1, %v177_v22 }
  0x8a   : > { %187 = vst.msk [vmem:[#allocation2] sm:$0xf] %vm186_vm2, %v184_v21 }
  0x8b   : > { %v191_v23 = vpop.permute.xlu1 %190 }
  0x8c   : > { %v241_v24 = vpop.permute.xlu0 %240  ;;  %194 = vst.msk [vmem:[#allocation2] sm:$0xf] %vm193_vm3, %v191_v23 }
  0x8d   : > { %243 = vst.msk [vmem:[#allocation2 + $0x4] sm:$0xf] %vm186_vm2, %v241_v24 }
  0x8f   : > { %v265_v25 = vpop.permute.xlu1 %264 }
  0x90   : > { %v247_v26 = vpop.permute.xlu0 %246  ;;  %v266_v31 = vrot.slane %v265_v25, 4 }
  0x91   : > { %249 = vst.msk [vmem:[#allocation2 + $0x4] sm:$0xf] %vm193_vm3, %v247_v26 }
  0x92   : > { %v268_v35 = vsel %vm267_vm6, %v265_v25, %v266_v31 }
  0x93   : > { %v219_v27 = vpop.permute.xlu1 %218 }
  0x94   : > { %v198_v28 = vpop.permute.xlu0 %197  ;;  %v220_v32 = vrot.slane %v219_v27, 4 }
  0x95   : > { %201 = vst.msk [vmem:[#allocation2] sm:$0xf] %vm200_vm4, %v198_v28 }
  0x96   : > { %v222_v36 = vsel %vm221_vm7, %v219_v27, %v220_v32 }
  0x97   : > { %v205_v29 = vpop.permute.xlu1 %204 }
  0x98   : > { %v253_v30 = vpop.permute.xlu0 %252  ;;  %208 = vst.msk [vmem:[#allocation2] sm:$0xf] %vm207_vm5, %v205_v29 }
  0x99   : > { %255 = vst.msk [vmem:[#allocation2 + $0x4] sm:$0xf] %vm200_vm4, %v253_v30 }
  0x9b   : > { %v212_v33 = vpop.permute.xlu1 %211 }
  0x9c   : > { %v259_v34 = vpop.permute.xlu0 %258  ;;  %215 = vst.msk [vmem:[#allocation2] sm:$0xf] %vm214_vm8, %v212_v33 }
  0x9d   : > { %261 = vst.msk [vmem:[#allocation2 + $0x4] sm:$0xf] %vm207_vm5, %v259_v34 }
  0x9e   : > { %225 = vst.msk [vmem:[#allocation2] sm:$0xf] %vm224_vm9, %v222_v36 }
  0x9f   : > { %270 = vst.msk [vmem:[#allocation2 + $0x4] sm:$0xf] %vm214_vm8, %v268_v35 }
  0xa0   : > { %v274_v37 = vpop.permute.xlu0 %273 }
  0xa1   : > { %276 = vst.msk [vmem:[#allocation2 + $0x4] sm:$0xf] %vm224_vm9, %v274_v37 }
  0xa8   : > { %v277_v38 = vld [vmem:[#allocation2] sm:$0xff] }
  0xa9   : > { %v278_v40 = vunpack.c.l.bf16 %v277_v38  ;;  %v279_v41 = vunpack.c.h.bf16 %v277_v38 }
  0xac   : > { %v284_v39 = vpop.permute.xlu1 %283 }
  0xad   : > { %v286_v42 = vmul.f32 %v284_v39, %v278_v40  ;;  %v287_v43 = vmul.f32 %v284_v39, %v279_v41 }
  0xb1   : > { %v292_v44 = vpop.permute.xlu0 %291 }
  0xb2   : > { %v294_v45 = vadd.f32 %v292_v44, %v286_v42  ;;  %v295_v46 = vadd.f32 %v292_v44, %v287_v43 }
  0xb4   : > { %296 = vst [vmem:[%s170_s15] sm:$0xff] %v294_v45  ;;  %297 = vst [vmem:[%s170_s15 + $0x8] sm:$0xff] %v295_v46 }
  0xb5 PF: > { %s13_s12 = sadd.s32 1, %s398_s12  }
  0xb6   : > { %p10_p4 = scmp.ge.s32.totalorder %s13_s12, 4  }
  0xb8   :  { %12 = sbr.rel (!%p10_p4) target bundleno = 1 (0x1), region = 62 }

// kernel: conv_bn_forward.2
= control target key start
LH: loop header
LB: loop body
LE: loop exit
PB: predicated region body
PF: predicated region fallthrough
CT: control target
= control target key end

     0   :  { %s1158_s18 = smov 0   ;;  %s1160_s19 = smov 0   ;;  %s1299_s0 = inlined_call_operand.vmem [shape: bf16[2,2,16,294], index: 0, kind: input, shape index: {}]   ;;  %s1300_s1 = inlined_call_operand.vmem [shape: bf16[16,144], index: 1, kind: input, shape index: {}]   ;;  %s1301_s2 = inlined_call_operand.vmem [shape: f32[1,512], index: 2, kind: input, shape index: {}]   ;;  %s1302_s3 = inlined_call_operand.vmem [shape: bf16[2,16,512], index: 3, kind: output, shape index: {0}]   ;;  %s1303_s4 = inlined_call_operand.vmem [shape: f32[2,2,16,1], index: 4, kind: output, shape index: {1}]   ;;  %s1304_s5 = inlined_call_operand.vmem [shape: f32[2,2,16,1], index: 5, kind: output, shape index: {2}]  }
   0x1   :  { %s1162_s20 = smov 0   ;;  %s1164_s21 = smov 0  }
   0x2   :  { %s1166_s22 = smov 0   ;;  %s1168_s23 = smov 0  }
   0x3   :  { %s1170_s24 = smov 0  }
   0x4 LB: > { %s25_s25 = sadd.s32 1, %s1110_s22  ;;  %s28_s26 = sadd.s32 1, %s1114_s23  ;;  %s1118_s24 = sphi %s1170_s24, %s16_s24   ;;  %s1114_s23 = sphi %s1168_s23, %s1311_s23   ;;  %s1110_s22 = sphi %s1166_s22, %s1310_s22   ;;  %s1106_s21 = sphi %s1164_s21, %s1309_s21   ;;  %s1102_s20 = sphi %s1162_s20, %s1308_s20   ;;  %s1098_s19 = sphi %s1160_s19, %s1307_s19   ;;  %s1094_s18 = sphi %s1158_s18, %s1306_s18  }
   0x5   : > { %p26_p0 = scmp.ge.s32.totalorder %s25_s25, 2  ;;  %s931_s27 = sadd.s32 4294967295, %s1118_s24  }
   0x6   : > { %p122_p1 = scmp.ne.s32.totalorder %s1098_s19, %s1094_s18  ;;  %p123_p2 = scmp.eq.s32.totalorder %s931_s27, 3 }
   0x7   : > { %s1313_s25 = smov (%p26_p0, %s25_s25), 0  ;;  %s1315_s26 = smov (!%p26_p0, %s28_s26), %s1114_s23 }
   0x8   : > { %s108_s28 = ssub.s32 %s1110_s22, %s1313_s25  ;;  %p30_p3 = scmp.ge.s32.totalorder %s1315_s26, 2 }
   0x9   : > { %p935_p4 = scmp.ge.s32.totalorder %s1118_s24, 1  ;;  %p1204_p5 = por %p123_p2, %p122_p1 }
   0xa   : > { %p226_p6 = scmp.lt.s32.totalorder %s1118_s24, 5  ;;  %s1317_s26 = smov (%p30_p3, %s1315_s26), 0 }
   0xb   : > { %s107_s30 = ssub.s32 %s1114_s23, %s1317_s26  ;;  %s112_s7 = sadd.s32 1, %s1098_s19 }
   0xc   : > { %p227_p7 = pnand %p935_p4, %p226_p6  ;;  %s109_s6 = sor.u32 %s108_s28, %s107_s30 }
   0xd   : > { %p110_p8 = scmp.eq.s32.totalorder %s109_s6, 0  ;;  %p279_p9 = scmp.lt.s32.totalorder (!%p227_p7), %s1106_s21, 1  ;;  %v1063_v9 = vld [vmem:[%s1300_s1 + $0x4] ss:$8 sps:$4 sm:$0xff] (!%p227_p7)   ;;  %vm596_vm0 = vcmask (!%p227_p7), 130048   ;;  %vm350_vm1 = vcmask (!%p227_p7), 1039360   ;;  %v659_v52 = vlaneseq (!%p227_p7) }
   0xe   : > { %230 = sbr.rel (%p227_p7) target bundleno = 562 (0x232), region = 32  ;;  %p281_p10 = scmp.lt.s32.totalorder (!%p227_p7), %s1102_s20, 1  ;;  %973 = vmatprep.mubr.msk.bf16.mxu0 (!%p227_p7), %vm596_vm0, %v1063_v9  ;;  %vm380_vm2 = vcmask (!%p227_p7), 1031168   ;;  %vm410_vm3 = vcmask (!%p227_p7), 900096   ;;  %vm440_vm4 = vcmask (!%p227_p7), 891904   ;;  %vm470_vm5 = vcmask (!%p227_p7), 883712  }
   0xf   : > { %s1215_s8 = scalar_select %p110_p8, %s1098_s19, %s112_s7  }
  0x10   : > { %s1120_s27 = smov (!%p227_p7), 127   ;;  %s1121_s28 = smov (!%p227_p7), 126   ;;  %vm500_vm6 = vcmask (!%p227_p7), 752640   ;;  %vm530_vm7 = vcmask (!%p227_p7), 744448   ;;  %vm560_vm8 = vcmask (!%p227_p7), 736256   ;;  %v660_v53 = vshrl.u32 (!%p227_p7), %v659_v52, 7 }
  0x11   : > { %s1122_s30 = smov (!%p227_p7), 110   ;;  %s1123_s6 = smov (!%p227_p7), 109   ;;  %v1061_v51 = vld [vmem:[%s1300_s1] ss:$8 sps:$4 sm:$0xff] (!%p227_p7)   ;;  %vm679_vm9 = vcmask (!%p227_p7), 7168  }
  0x12   : > { %s1124_s7 = smov (!%p227_p7), 108   ;;  %s1127_s15 = smov (!%p227_p7), 90   ;;  %v661_v54 = vsub.s32 (!%p227_p7), 0, %v660_v53  ;;  %v665_v56 = vsub.s32 (!%p227_p7), 1, %v660_v53 }
  0x15   : > { %s1220_s9 = scalar_select %p279_p9, %s1106_s21, 1 }
  0x16   : > { %s1223_s10 = scalar_select %p281_p10, %s1102_s20, 1 }
  0x17   : > { %s985_s11 = smul.u32 12, %s1220_s9 }
  0x18   : > { %s984_s12 = smul.u32 6, %s1223_s10 }
  0x1a   : > { %s285_s13 = sadd.s32 %s985_s11, %s984_s12  ;;  %s1125_s11 = smov 92  }
  0x1b   : > { %s937_s14 = sshll.u32 %s285_s13, 2  ;;  %s940_s13 = sshll.u32 %s1220_s9, 2 }
  0x1c   : > { %s1230_s17 = scalar_lea.vmem %s1299_s0, %s937_s14  ;;  %s1126_s14 = smov 91  }
  0x1d   : > { %v1050_v0 = vld [vmem:[%s1230_s17 + $0x4] ss:$12 sps:$4 sm:$0xff]   ;;  %v1052_v1 = vld [vmem:[%s1230_s17] ss:$12 sps:$4 sm:$0xff]   ;;  %v1053_v2 = vld [vmem:[%s1230_s17 + $0x8] ss:$12 sps:$4 sm:$0xff]  }
  0x1e   : > { %346 = vrot.lane.b32.xlu0 %v1050_v0, %s1120_s27  ;;  %600 = vmatprep.subr.bf16.mxu0 %v1050_v0  ;;  %v1054_v3 = vld [vmem:[%s1230_s17 + $0x8] ss:$12 sps:$4 sm:$0xff]   ;;  %s978_s9 = sshll.u32 (%p1204_p5), %s1106_s21, 3 }
  0x1f   : > { %344 = vrot.lane.b32.xlu1 %v1052_v1, %s1120_s27  ;;  %601 = vmatpush1.bf16.msra.mxu0 %v1052_v1  ;;  %v1055_v4 = vld [vmem:[%s1230_s17 + $0x8] ss:$12 sps:$4 sm:$0xff]  }
  0x20   : > { %v1056_v5 = vld [vmem:[%s1230_s17 + $0x8] ss:$12 sps:$4 sm:$0xff]  }
  0x21   : > { %v1057_v6 = vld [vmem:[%s1230_s17 + $0x8] ss:$12 sps:$4 sm:$0xff]  }
  0x22   : > { %348 = vrot.lane.b32.xlu0 %v1053_v2, %s1120_s27  ;;  %v1058_v7 = vld [vmem:[%s1230_s17 + $0x8] ss:$12 sps:$4 sm:$0xff]   ;;  %s1249_s27 = sshll.u32 %s1102_s20, 1 }
  0x23   : > { %376 = vrot.lane.b32.xlu1 %v1050_v0, %s1121_s28  ;;  %v1059_v8 = vld [vmem:[%s1230_s17 + $0x8] ss:$12 sps:$4 sm:$0xff]   ;;  %p289_p11 = scmp.lt.s32.totalorder %s1249_s27, 3 }
  0x24   : > { %v1060_v10 = vld [vmem:[%s1230_s17 + $0x8] ss:$12 sps:$4 sm:$0xff]  }
  0x26   : > { %378 = vrot.lane.b32.xlu0 %v1054_v3, %s1121_s28 }
  0x27   : > { %374 = vrot.lane.b32.xlu1 %v1052_v1, %s1121_s28  ;;  %s290_s28 = scalar_select %p289_p11, %s1249_s27, 3 }
  0x2a   : > { %406 = vrot.lane.b32.xlu0 %v1050_v0, %s1122_s30 }
  0x2b   : > { %408 = vrot.lane.b32.xlu1 %v1055_v4, %s1122_s30 }
  0x2e   : > { %404 = vrot.lane.b32.xlu0 %v1052_v1, %s1122_s30 }
  0x2f   : > { %436 = vrot.lane.b32.xlu1 %v1050_v0, %s1123_s6 }
  0x32   : > { %438 = vrot.lane.b32.xlu0 %v1056_v5, %s1123_s6 }
  0x33   : > { %434 = vrot.lane.b32.xlu1 %v1052_v1, %s1123_s6 }
  0x36   : > { %466 = vrot.lane.b32.xlu0 %v1050_v0, %s1124_s7 }
  0x37   : > { %468 = vrot.lane.b32.xlu1 %v1057_v6, %s1124_s7 }
  0x3a   : > { %464 = vrot.lane.b32.xlu0 %v1052_v1, %s1124_s7  ;;  %s291_s7 = scalar_lea.vmem %s1301_s2, %s290_s28 }
  0x3b   : > { %496 = vrot.lane.b32.xlu1 %v1050_v0, %s1125_s11  ;;  %v657_v55 = vld [vmem:[%s291_s7] sm:$0x3] }
  0x3c   : > { %v662_v57 = vrot.slane %v657_v55, %v661_v54  ;;  %v666_v58 = vrot.slane %v657_v55, %v665_v56 }
  0x3e   : > { %498 = vrot.lane.b32.xlu0 %v1058_v7, %s1125_s11 }
  0x3f   : > { %494 = vrot.lane.b32.xlu1 %v1052_v1, %s1125_s11  ;;  %s254_s11 = sand.u32 1, %s1094_s18   ;;  %s939_s18 = sshll.u32 %s1223_s10, 1 }
  0x40   : > { %s936_s12 = sshll.u32 %s254_s11, 4  ;;  %s721_s10 = sadd.s32 (%p1204_p5), %s978_s9, %s1249_s27 }
  0x41   : > { %s1257_s20 = scalar_lea.vmem [#allocation3], %s936_s12  ;;  %s979_s11 = sshll.u32 (%p1204_p5), %s721_s10, 2 }
  0x42   : > { %526 = vrot.lane.b32.xlu0 %v1050_v0, %s1126_s14 }
  0x43   : > { %528 = vrot.lane.b32.xlu1 %v1059_v8, %s1126_s14 }
  0x46   : > { %524 = vrot.lane.b32.xlu0 %v1052_v1, %s1126_s14  ;;  %s300_s14 = sadd.s32 %s940_s13, %s939_s18  ;;  %s723_s13 = scalar_lea.vmem (%p1204_p5), %s1302_s3, %s979_s11 }
  0x47   : > { %556 = vrot.lane.b32.xlu1 %v1050_v0, %s1127_s15 }
  0x4a   : > { %558 = vrot.lane.b32.xlu0 %v1060_v10, %s1127_s15 }
  0x4b   : > { %554 = vrot.lane.b32.xlu1 %v1052_v1, %s1127_s15  ;;  %s941_s15 = sshll.u32 %s300_s14, 3 }
  0x4c   : > { %s302_s28 = scalar_lea.vmem %s1303_s4, %s941_s15  ;;  %s311_s7 = scalar_lea.vmem %s1304_s5, %s941_s15 }
  0x90   : > { %v347_v11 = vpop.permute.xlu0 %346 }
  0x91   : > { %v345_v12 = vpop.permute.xlu1 %344 }
  0x92   : > { %v351_v16 = vsel %vm350_vm1, %v345_v12, %v347_v11 }
  0x94   : > { %v349_v13 = vpop.permute.xlu0 %348 }
  0x95   : > { %v377_v14 = vpop.permute.xlu1 %376  ;;  %v352_v15 = vsel %vm350_vm1, %v347_v11, %v349_v13 }
  0x96   : > { %602 = vmatprep.subr.bf16.mxu0 %v352_v15 }
  0x97   : > { %603 = vmatpush1.bf16.msra.mxu0 %v351_v16 }
  0x98   : > { %v379_v17 = vpop.permute.xlu0 %378 }
  0x99   : > { %v375_v18 = vpop.permute.xlu1 %374  ;;  %v382_v19 = vsel %vm380_vm2, %v377_v14, %v379_v17 }
  0x9a   : > { %604 = vmatprep.subr.bf16.mxu0 %v382_v19  ;;  %v381_v20 = vsel %vm380_vm2, %v375_v18, %v377_v14 }
  0x9b   : > { %605 = vmatpush1.bf16.msra.mxu0 %v381_v20 }
  0x9c   : > { %v407_v21 = vpop.permute.xlu0 %406 }
  0x9d   : > { %v409_v22 = vpop.permute.xlu1 %408 }
  0x9e   : > { %v412_v23 = vsel %vm410_vm3, %v407_v21, %v409_v22 }
  0x9f   : > { %606 = vmatprep.subr.bf16.mxu0 %v412_v23 }
  0xa0   : > { %v405_v24 = vpop.permute.xlu0 %404 }
  0xa1   : > { %v437_v25 = vpop.permute.xlu1 %436  ;;  %v411_v26 = vsel %vm410_vm3, %v405_v24, %v407_v21 }
  0xa2   : > { %607 = vmatpush1.bf16.msra.mxu0 %v411_v26 }
  0xa4   : > { %v439_v27 = vpop.permute.xlu0 %438 }
  0xa5   : > { %v435_v28 = vpop.permute.xlu1 %434  ;;  %v442_v29 = vsel %vm440_vm4, %v437_v25, %v439_v27 }
  0xa6   : > { %608 = vmatprep.subr.bf16.mxu0 %v442_v29  ;;  %v441_v30 = vsel %vm440_vm4, %v435_v28, %v437_v25 }
  0xa7   : > { %609 = vmatpush1.bf16.msra.mxu0 %v441_v30 }
  0xa8   : > { %v467_v31 = vpop.permute.xlu0 %466 }
  0xa9   : > { %v469_v32 = vpop.permute.xlu1 %468 }
  0xaa   : > { %v472_v33 = vsel %vm470_vm5, %v467_v31, %v469_v32 }
  0xab   : > { %610 = vmatprep.subr.bf16.mxu0 %v472_v33 }
  0xac   : > { %v465_v34 = vpop.permute.xlu0 %464 }
  0xad   : > { %v497_v35 = vpop.permute.xlu1 %496  ;;  %v471_v36 = vsel %vm470_vm5, %v465_v34, %v467_v31 }
  0xae   : > { %611 = vmatpush1.bf16.msra.mxu0 %v471_v36 }
  0xb0   : > { %v499_v37 = vpop.permute.xlu0 %498 }
  0xb1   : > { %v495_v38 = vpop.permute.xlu1 %494  ;;  %v502_v39 = vsel %vm500_vm6, %v497_v35, %v499_v37 }
  0xb2   : > { %612 = vmatprep.subr.bf16.mxu0 %v502_v39  ;;  %v501_v40 = vsel %vm500_vm6, %v495_v38, %v497_v35 }
  0xb3   : > { %613 = vmatpush1.bf16.msra.mxu0 %v501_v40 }
  0xb4   : > { %v527_v41 = vpop.permute.xlu0 %526 }
  0xb5   : > { %v529_v42 = vpop.permute.xlu1 %528 }
  0xb6   : > { %v532_v43 = vsel %vm530_vm7, %v527_v41, %v529_v42 }
  0xb7   : > { %614 = vmatprep.subr.bf16.mxu0 %v532_v43 }
  0xb8   : > { %v525_v44 = vpop.permute.xlu0 %524 }
  0xb9   : > { %v557_v45 = vpop.permute.xlu1 %556  ;;  %v531_v46 = vsel %vm530_vm7, %v525_v44, %v527_v41 }
  0xba   : > { %615 = vmatpush1.bf16.msra.mxu0 %v531_v46 }
  0xbc   : > { %v559_v47 = vpop.permute.xlu0 %558 }
  0xbd   : > { %v555_v48 = vpop.permute.xlu1 %554  ;;  %v562_v49 = vsel %vm560_vm8, %v557_v45, %v559_v47 }
  0xbe   : > { %616 = vmatprep.subr.bf16.mxu0 %v562_v49  ;;  %v561_v50 = vsel %vm560_vm8, %v555_v48, %v557_v45 }
  0xbf   : > { %617 = vmatpush1.bf16.msra.mxu0 %v561_v50 }
  0xc2   : > { %633 = vmatmul.mubr.bf16.vlgmr.msra.gmra.mrb[0].mxu0 %v1061_v51 }
 0x195   : > { %v634_v59 = vpop.f32.mrb[0].mxu0 }
 0x196   : > { %v669_v60 = vmul.f32 %v662_v57, %v634_v59  ;;  %v636_v61 = vpop.f32.mrb[1].mxu0 }
 0x197   : > { %v982_v62 = vpack.c.bf16 %v636_v61, %v634_v59  ;;  %v670_v63 = vmul.f32 %v666_v58, %v636_v61  ;;  %v638_v0 = vpop.f32.mrb[2].mxu0 }
 0x198   : > { %v671_v1 = vmul.f32 %v662_v57, %v638_v0  ;;  %v640_v2 = vpop.f32.mrb[3].mxu0  ;;  %v682_v3 = vmul.f32 %v669_v60, %v669_v60 }
 0x199   : > { %v983_v4 = vpack.c.bf16 %v640_v2, %v638_v0  ;;  %655 = vst [vmem:[%s1257_s20] sm:$0xff] %v982_v62  ;;  %v672_v5 = vmul.f32 %v666_v58, %v640_v2  ;;  %v673_v6 = vadd.f32 %v670_v63, %v669_v60  ;;  %v683_v7 = vmul.f32 %v670_v63, %v670_v63 }
 0x19a   : > { %v684_v8 = vmul.f32 %v671_v1, %v671_v1 }
 0x19b   : > { %656 = vst [vmem:[%s1257_s20 + $0x8] sm:$0xff] %v983_v4  ;;  %v685_v9 = vmul.f32 %v672_v5, %v672_v5  ;;  %674 = vadd.xlane.f32.xlu0 %v673_v6  ;;  %v676_v10 = vadd.f32 %v672_v5, %v671_v1  ;;  %v686_v11 = vadd.f32 %v683_v7, %v682_v3 }
 0x19d   : > { %677 = vadd.xlane.f32.xlu1 %v676_v10  ;;  %v689_v12 = vadd.f32 %v685_v9, %v684_v8 }
 0x19f   : > { %687 = vadd.xlane.f32.xlu0 %v686_v11 }
 0x1a0   : > { %v753_v17 = vld [vmem:[%s1257_s20] sm:$0xff] (%p1204_p5) }
 0x1a1   : > { %754 = vst [vmem:[%s723_s13] sm:$0xff] (%p1204_p5), %v753_v17 }
 0x1a2   : > { %v755_v18 = vld [vmem:[%s1257_s20 + $0x8] sm:$0xff] (%p1204_p5) }
 0x1a3   : > { %690 = vadd.xlane.f32.xlu0 %v689_v12  ;;  %756 = vst [vmem:[%s723_s13 + $0x10] sm:$0xff] (%p1204_p5), %v755_v18 }
 0x228   : > { %v675_v13 = vpop.xlane.xlu0 %674 }
 0x229   : > { %680 = vst.msk [vmem:[%s302_s28] sm:$0xff] %vm679_vm9, %v675_v13 }
 0x22a   : > { %v678_v14 = vpop.xlane.xlu1 %677 }
 0x22b   : > { %681 = vst.msk [vmem:[%s302_s28 + $0x8] sm:$0xff] %vm679_vm9, %v678_v14  ;;  %718 = sbr.rel (!%p1204_p5) target bundleno = 562 (0x232), region = 36 }
 0x22c   : > { %v688_v15 = vpop.xlane.xlu0 %687 }
 0x22d   : > { %692 = vst.msk [vmem:[%s311_s7] sm:$0xff] %vm679_vm9, %v688_v15 }
 0x230   : > { %v691_v16 = vpop.xlane.xlu0 %690 }
 0x231   : > { %693 = vst.msk [vmem:[%s311_s7 + $0x8] sm:$0xff] %vm679_vm9, %v691_v16 }
 0x232 PF: > { %s16_s24 = sadd.s32 1, %s1118_s24   ;;  %s1306_s18 = smov %s1098_s19 }
 0x233   : > { %p13_p12 = scmp.ge.s32.totalorder %s16_s24, 6   ;;  %s1307_s19 = smov %s1215_s8 }
 0x234   : > { %s1308_s20 = smov %s1110_s22  ;;  %s1309_s21 = smov %s1114_s23 }
 0x235   : > { %s1310_s22 = smov %s1313_s25  ;;  %s1311_s23 = smov %s1317_s26 }
 0x236   :  { %15 = sbr.rel (!%p13_p12) target bundleno = 4 (0x4), region = 127 }

</bundles_post_ra>
